<compile_context>
chip_gen: v5e
topology: v5e:2x2
jax: 0.10.0
libtpu: 0.0.40
codegen_flags: <defaults>
</compile_context>

<pallas_src>
import functools
import warnings

import jax
import jax.numpy as jnp
from jax.experimental import pallas as pl
from jax.experimental.pallas import tpu as pltpu

# Donation is best-effort; if XLA cannot reuse the buffer it only warns.
warnings.filterwarnings("ignore", message=".*donated buffers were not usable.*")


def _lif_kernel(dv_ref, v_ref, spike_ref, vout_ref, *, tau, v_threshold, v_reset):
    # Stream dv in its native dtype (f32 or bf16); compute in f32 on the VPU.
    dv = dv_ref[...].astype(jnp.float32)
    v = v_ref[...].astype(jnp.float32)
    # Membrane update (matches: v + (dv - (v - v_reset)) / tau).
    v_new = v + (dv - (v - v_reset)) / tau
    # Spike generation: forward of every surrogate is a hard threshold.
    spiked = (v_new - v_threshold) > 0.0
    spike_ref[...] = spiked.astype(spike_ref.dtype)
    # Hard reset of the membrane potential where a spike occurred.
    vout_ref[...] = jnp.where(spiked, jnp.float32(v_reset), v_new).astype(vout_ref.dtype)


def _pick_block_rows(m, f, v_bytes):
    """Rows per block: multiple of 8, ~<=2 MiB/array/block, >=2 blocks for v7x."""
    if m <= 8:
        return m  # block dim equal to full array dim satisfies the tiling rule
    # ~2 MiB per array per block is already at the HBM-roofline plateau.
    by_vmem = max(8, ((2 * 1024 * 1024) // max(1, v_bytes * f)) // 8 * 8)
    # At least 2 grid blocks so both v7x TensorCores get work.
    by_split = max(8, ((pl.cdiv(m, 2) + 7) // 8) * 8)
    m_rounded = ((m + 7) // 8) * 8
    return min(by_vmem, by_split, m_rounded)


@functools.partial(
    jax.jit,
    static_argnames=("tau", "v_threshold", "v_reset"),
    donate_argnames=("v",),
)
def lif_forward(dv, v, *, tau=1.0, v_threshold=1.0, v_reset=0.0):
    """Single LIF time-step. Returns (spike, v_next); spike has dv's dtype,
    v_next has v's dtype (the membrane state buffer is donated / aliased)."""
    assert dv.shape == v.shape
    orig_shape = dv.shape

    # Collapse leading dims to 2D (metadata-only reshape under jit).
    if dv.ndim == 1:
        dv2, v2 = dv.reshape(1, -1), v.reshape(1, -1)
    elif dv.ndim == 2:
        dv2, v2 = dv, v
    else:
        f = orig_shape[-1]
        dv2, v2 = dv.reshape(-1, f), v.reshape(-1, f)

    m, f = dv2.shape
    block_rows = _pick_block_rows(m, f, v2.dtype.itemsize)
    num_blocks = pl.cdiv(m, block_rows)

    block = pl.BlockSpec((block_rows, f), lambda i: (i, 0))

    kernel = functools.partial(
        _lif_kernel,
        tau=float(tau),
        v_threshold=float(v_threshold),
        v_reset=float(v_reset),
    )

    spike2, v_next2 = pl.pallas_call(
        kernel,
        out_shape=(
            jax.ShapeDtypeStruct((m, f), dv2.dtype),   # spike (dv's dtype)
            jax.ShapeDtypeStruct((m, f), v2.dtype),    # v_next (state dtype)
        ),
        grid_spec=pl.GridSpec(
            grid=(num_blocks,),
            in_specs=[block, block],
            out_specs=[block, block],
        ),
        # Real in-place membrane-state update: caller's v buffer -> v_next.
        input_output_aliases={1: 1},
        compiler_params=pltpu.CompilerParams(
            dimension_semantics=("parallel",),
            # Keeps v5e (16 MiB scoped default) double-buffered; safely under
            # v7x's 64 MiB physical VMEM per TensorCore.
            vmem_limit_bytes=48 * 1024 * 1024,
        ),
    )(dv2, v2)

    return spike2.reshape(orig_shape), v_next2.reshape(orig_shape)


def lif_forward_ref(dv, v, *, tau=1.0, v_threshold=1.0, v_reset=0.0):
    """Pure-JAX reference mirroring the PyTorch LIF.forward."""
    v = v.astype(jnp.float32)
    v_new = v + (dv.astype(jnp.float32) - (v - v_reset)) / tau
    spike = ((v_new - v_threshold) > 0.0).astype(dv.dtype)
    v_next = (1.0 - spike.astype(jnp.float32)) * v_new + spike.astype(jnp.float32) * v_reset
    return spike, v_next


if __name__ == "__main__":
    # Small, deterministic example: 128 nodes x 256 features of input current.
    key = jax.random.PRNGKey(0)
    M, F = 128, 256
    dv = jax.random.normal(key, (M, F), dtype=jnp.float32) * 2.0

    tau, v_threshold, v_reset = 1.0, 1.0, 0.0
    # LIF.__init__: v = 0.0; reset('subtract'): v = v - v_threshold
    v0 = jnp.full((M, F), 0.0 - v_threshold, dtype=jnp.float32)

    # Compute references BEFORE the kernel calls (v buffers are donated).
    spike_ref1, v_ref1 = lif_forward_ref(dv, v0, tau=tau, v_threshold=v_threshold, v_reset=v_reset)
    spike_ref2, _ = lif_forward_ref(dv, v_ref1, tau=tau, v_threshold=v_threshold, v_reset=v_reset)

    # Step 1 (v0 is donated / aliased into v_next).
    spike, v_next = lif_forward(dv, v0, tau=tau, v_threshold=v_threshold, v_reset=v_reset)
    spike = jax.block_until_ready(spike)
    v_next = jax.block_until_ready(v_next)

    assert jnp.array_equal(spike, spike_ref1), "spike mismatch"
    assert jnp.allclose(v_next, v_ref1, atol=1e-6), "membrane state mismatch"

    # Step 2 exercises the stateful recurrence (v_next donated in turn).
    spike2, v_next2 = lif_forward(dv, v_next, tau=tau, v_threshold=v_threshold, v_reset=v_reset)
    spike2 = jax.block_until_ready(spike2)
    jax.block_until_ready(v_next2)

    assert jnp.array_equal(spike2, spike_ref2), "step-2 spike mismatch"

    print("KERNEL_OK")
</pallas_src>

<mosaic_0001>
module attributes {stable_mosaic.version = 11 : i64} {
  func.func @_lif_kernel(%arg0: i32, %arg1: memref<64x256xf32, #tpu.memory_space<vmem>>, %arg2: memref<64x256xf32, #tpu.memory_space<vmem>>, %arg3: memref<64x256xf32, #tpu.memory_space<vmem>>, %arg4: memref<64x256xf32, #tpu.memory_space<vmem>>) attributes {dimension_semantics = [#tpu.dimension_semantics<parallel>], iteration_bounds = array<i64: 2>, scalar_prefetch = 0 : i64, scratch_operands = 0 : i64, tpu.core_type = #tpu.core_type<tc>, window_params = [{transform_indices = @transform_0, window_bounds = array<i64: 64, 256>}, {transform_indices = @transform_1, window_bounds = array<i64: 64, 256>}, {transform_indices = @transform_2, window_bounds = array<i64: 64, 256>}, {transform_indices = @transform_3, window_bounds = array<i64: 64, 256>}]} {
    %c0 = arith.constant 0 : index
    %c0_0 = arith.constant 0 : index
    %0 = vector.load %arg1[%c0, %c0_0] : memref<64x256xf32, #tpu.memory_space<vmem>>, vector<64x256xf32>
    %c0_1 = arith.constant 0 : index
    %c0_2 = arith.constant 0 : index
    %1 = vector.load %arg2[%c0_1, %c0_2] : memref<64x256xf32, #tpu.memory_space<vmem>>, vector<64x256xf32>
    %cst = arith.constant 0.000000e+00 : f32
    %2 = vector.broadcast %cst : f32 to vector<64x256xf32>
    %3 = arith.subf %1, %2 : vector<64x256xf32>
    %4 = arith.subf %0, %3 : vector<64x256xf32>
    %cst_3 = arith.constant 1.000000e+00 : f32
    %5 = vector.broadcast %cst_3 : f32 to vector<64x256xf32>
    %6 = arith.divf %4, %5 : vector<64x256xf32>
    %7 = arith.addf %1, %6 : vector<64x256xf32>
    %cst_4 = arith.constant 1.000000e+00 : f32
    %8 = vector.broadcast %cst_4 : f32 to vector<64x256xf32>
    %9 = arith.subf %7, %8 : vector<64x256xf32>
    %cst_5 = arith.constant 0.000000e+00 : f32
    %10 = vector.broadcast %cst_5 : f32 to vector<64x256xf32>
    %11 = arith.cmpf ogt, %9, %10 : vector<64x256xf32>
    %12 = arith.extui %11 : vector<64x256xi1> to vector<64x256xi32>
    %13 = arith.sitofp %12 : vector<64x256xi32> to vector<64x256xf32>
    %c0_6 = arith.constant 0 : index
    %c0_7 = arith.constant 0 : index
    %14 = vector.load %arg3[%c0_6, %c0_7] : memref<64x256xf32, #tpu.memory_space<vmem>>, vector<64x256xf32>
    tpu.vector_store %arg3[%c0_6, %c0_7], %13 {strides = array<i32>} : memref<64x256xf32, #tpu.memory_space<vmem>>, vector<64x256xf32>,
    %cst_8 = arith.constant 0.000000e+00 : f32
    %15 = vector.broadcast %cst_8 : f32 to vector<64x256xf32>
    %16 = arith.select %11, %15, %7 : vector<64x256xi1>, vector<64x256xf32>
    %c0_9 = arith.constant 0 : index
    %c0_10 = arith.constant 0 : index
    %17 = vector.load %arg4[%c0_9, %c0_10] : memref<64x256xf32, #tpu.memory_space<vmem>>, vector<64x256xf32>
    tpu.vector_store %arg4[%c0_9, %c0_10], %16 {strides = array<i32>} : memref<64x256xf32, #tpu.memory_space<vmem>>, vector<64x256xf32>,
    return
  }
  func.func @transform_0(%arg0: i32) -> (i32, i32) {
    %c0_i32 = arith.constant 0 : i32
    %c0_i32_0 = arith.constant 0 : i32
    return %arg0, %c0_i32 : i32, i32
  }
  func.func @transform_1(%arg0: i32) -> (i32, i32) {
    %c0_i32 = arith.constant 0 : i32
    %c0_i32_0 = arith.constant 0 : i32
    return %arg0, %c0_i32 : i32, i32
  }
  func.func @transform_2(%arg0: i32) -> (i32, i32) {
    %c0_i32 = arith.constant 0 : i32
    %c0_i32_0 = arith.constant 0 : i32
    return %arg0, %c0_i32 : i32, i32
  }
  func.func @transform_3(%arg0: i32) -> (i32, i32) {
    %c0_i32 = arith.constant 0 : i32
    %c0_i32_0 = arith.constant 0 : i32
    return %arg0, %c0_i32 : i32, i32
  }
}

</mosaic_0001>

<bundles_post_ra>
// kernel: lif_forward.1
= control target key start
LH: loop header
LB: loop body
LE: loop exit
PB: predicated region body
PF: predicated region fallthrough
CT: control target
= control target key end

     0   :  { %9 = vsyncpa [#allocation3], 0  ;;  %s978_s0 = inlined_call_operand.vmem [shape: f32[128,256], index: 0, kind: input, shape index: {}]   ;;  %s979_s1 = inlined_call_operand.vmem [shape: f32[128,256], index: 1, kind: input, shape index: {}, may-alias: {1,3}]   ;;  %s980_s2 = inlined_call_operand.hbm [shape: f32[128,256], index: 2, kind: output, shape index: {0}]   ;;  %s981_s3 = inlined_call_operand.vmem [shape: f32[128,256], index: 3, kind: output, shape index: {1}, may-alias: {1,3}]  }
   0x1   :  { %11 = vsyncpa [#allocation3 + $0x1], 0  ;;  %s705_s12 = smov 0   ;;  %s707_s13 = smov 0  }
   0x2   :  { %s709_s14 = smov 0   ;;  %s711_s15 = smov 0  }
   0x3 LB: > { %s726_s16 = sadd.s32 4294967295, %s680_s15   ;;  %s519_s17 = sadd.s32 4294967294, %s680_s15   ;;  %s680_s15 = sphi %s711_s15, %s987_s15   ;;  %s676_s14 = sphi %s709_s14, %s986_s14   ;;  %s672_s13 = sphi %s707_s13, %s985_s13   ;;  %s668_s12 = sphi %s705_s12, %s984_s12  }
   0x4   : > { %s730_s18 = sadd.s32 1, %s680_s15   ;;  %s76_s19 = sadd.s32 1, %s676_s14 }
   0x5   : > { %s73_s20 = ssub.s32 %s680_s15, %s730_s18  ;;  %p86_p0 = scmp.ne.s32.totalorder %s676_s14, %s672_s13 }
   0x6   : > { %p74_p1 = scmp.eq.s32.totalorder %s73_s20, 0  ;;  %p87_p2 = scmp.eq.s32.totalorder %s726_s16, 1 }
   0x7   : > { %p92_p3 = scmp.ne.s32.totalorder %s672_s13, %s668_s12  ;;  %p93_p4 = scmp.eq.s32.totalorder %s519_s17, 1 }
   0x8   : > { %s741_s21 = scalar_select %p74_p1, %s676_s14, %s76_s19  }
   0x9   : > { %p743_p5 = por %p87_p2, %p86_p0  ;;  %p747_p6 = por %p93_p4, %p92_p3 }
   0xa   : > { %p522_p7 = scmp.ge.s32.totalorder %s680_s15, 1  ;;  %p157_p8 = scmp.lt.s32.totalorder %s680_s15, 3 }
   0xc   : > { %p158_p9 = pnand %p522_p7, %p157_p8 }
   0xd   : > { %s524_s24 = sshll.u32 (!%p158_p9), %s726_s16, 3  ;;  %s183_s5 = sand.u32 (!%p158_p9), 1, %s672_s13  }
   0xe   : > { %161 = sbr.rel (%p158_p9) target bundleno = 67 (0x43), region = 28  ;;  %p195_p10 = scmp.lt.s32.totalorder (!%p158_p9), %s524_s24, 15 }
   0xf   : > { %s780_s6 = sshll.u32 (!%p158_p9), %s183_s5, 7  ;;  %s575_s11 = sshll.u32 (!%p158_p9), %s726_s16, 7 }
  0x10   : > { %s807_s7 = scalar_lea.vmem (!%p158_p9), [#allocation2], %s780_s6  ;;  %s411_s20 = scalar_lea.hbm (!%p158_p9), %s980_s2, %s575_s11 }
  0x11   : > { %s412_s16 = sshll.u32 (!%p158_p9), %s807_s7, 4  ;;  %s638_s30 = scalar_lea.hbm (!%p158_p9), %s980_s2, 256  ;;  %s413_s16 = int_to_ptr.vmem [resolvable:$true] %s412_s16 }
  0x13   : > { %s989_s24 = smov (!%p195_p10, %s524_s24), 15  ;;  %v682_v35 = vmov 0.0  }
  0x14   : > { %s754_s25 = sshll.u32 %s989_s24, 4  ;;  %s414_s24 = sshll.u32 %s411_s20, 4  ;;  %s415_s24 = int_to_ptr.hbm [resolvable:$true] %s414_s24 }
  0x15   : > { %s760_s28 = scalar_lea.vmem %s978_s0, %s754_s25  ;;  %s766_s4 = scalar_lea.vmem %s979_s1, %s754_s25 }
  0x16   : > { %v216_v0 = vld [vmem:[%s760_s28] sm:$0xff]  ;;  %v217_v2 = vld [vmem:[%s760_s28 + $0x8] sm:$0xff]  ;;  %v218_v5 = vld [vmem:[%s760_s28 + $0x10] sm:$0xff]  ;;  %s820_s10 = scalar_lea.vmem %s981_s3, %s754_s25  ;;  %s393_s25 = scalar_lea.sflag [#allocation3], %s183_s5 }
  0x17   : > { %v232_v1 = vld [vmem:[%s766_s4] sm:$0xff]  ;;  %v233_v4 = vld [vmem:[%s766_s4 + $0x8] sm:$0xff]  ;;  %v234_v6 = vld [vmem:[%s766_s4 + $0x10] sm:$0xff]  ;;  %s632_s26 = sshra.s32 %s415_s24, 4  ;;  %s633_s26 = int_to_ptr.hbm [resolvable:$true] %s632_s26 }
  0x18   : > { %v248_v3 = vsub.f32 %v216_v0, %v232_v1  ;;  %v249_v7 = vsub.f32 %v217_v2, %v233_v4  ;;  %v250_v8 = vsub.f32 %v218_v5, %v234_v6  ;;  %v219_v9 = vld [vmem:[%s760_s28 + $0x18] sm:$0xff]  ;;  %v220_v11 = vld [vmem:[%s760_s28 + $0x20] sm:$0xff]  ;;  %v221_v15 = vld [vmem:[%s760_s28 + $0x28] sm:$0xff]  ;;  %s634_s27 = scalar_lea.hbm %s633_s26, 128  ;;  %p639_p0 = scmp.lt.s32.totalorder %s633_s26, %s980_s2 }
  0x19   : > { %v235_v10 = vld [vmem:[%s766_s4 + $0x18] sm:$0xff]  ;;  %v236_v14 = vld [vmem:[%s766_s4 + $0x20] sm:$0xff]  ;;  %v237_v16 = vld [vmem:[%s766_s4 + $0x28] sm:$0xff]  ;;  %p635_p11 = scmp.ne.s32.totalorder %s633_s26, %s634_s27  ;;  %p640_p1 = scmp.lt.s32.totalorder %s638_s30, %s634_s27 }
  0x1a   : > { %v264_v12 = vadd.f32 %v248_v3, %v232_v1  ;;  %v251_v13 = vsub.f32 %v219_v9, %v235_v10  ;;  %v265_v17 = vadd.f32 %v249_v7, %v233_v4  ;;  %v785_v18 = vadd.f32 %v250_v8, %v234_v6  ;;  %v222_v21 = vld [vmem:[%s760_s28 + $0x30] sm:$0xff]  ;;  %v223_v23 = vld [vmem:[%s760_s28 + $0x38] sm:$0xff]  ;;  %v224_v37 = vld [vmem:[%s760_s28 + $0x40] sm:$0xff] }
  0x1b   : > { %v252_v19 = vsub.f32 %v220_v11, %v236_v14  ;;  %v253_v20 = vsub.f32 %v221_v15, %v237_v16  ;;  %v238_v22 = vld [vmem:[%s766_s4 + $0x30] sm:$0xff]  ;;  %v239_v27 = vld [vmem:[%s766_s4 + $0x38] sm:$0xff]  ;;  %v240_v38 = vld [vmem:[%s766_s4 + $0x40] sm:$0xff]  ;;  %p636_p12 = pnand %p635_p11, %p743_p5  ;;  %p641_p2 = por %p640_p1, %p639_p0 }
  0x1c   : > { %v533_v24 = vadd.f32 -1.0, %v264_v12  ;;  %v790_v25 = vadd.f32 %v251_v13, %v235_v10  ;;  %v254_v26 = vsub.f32 %v222_v21, %v238_v22  ;;  %v534_v28 = vadd.f32 -1.0, %v265_v17  ;;  %v225_v42 = vld [vmem:[%s760_s28 + $0x48] sm:$0xff]  ;;  %v226_v47 = vld [vmem:[%s760_s28 + $0x50] sm:$0xff]  ;;  %v227_v49 = vld [vmem:[%s760_s28 + $0x58] sm:$0xff] }
  0x1d   : > { %v535_v29 = vadd.f32 -1.0, %v785_v18  ;;  %v794_v30 = vadd.f32 %v252_v19, %v236_v14  ;;  %v796_v31 = vadd.f32 %v253_v20, %v237_v16  ;;  %v255_v34 = vsub.f32 %v223_v23, %v239_v27  ;;  %v241_v43 = vld [vmem:[%s766_s4 + $0x48] sm:$0xff]  ;;  %v242_v48 = vld [vmem:[%s766_s4 + $0x50] sm:$0xff]  ;;  %v243_v50 = vld [vmem:[%s766_s4 + $0x58] sm:$0xff]  ;;  %p637_p13 = pneg %p636_p12 }
  0x1e   : > { %vm296_vm0 = vcmp.gt.f32.partialorder %v533_v24, 0.0  ;;  %v799_v32 = vadd.f32 -1.0, %v790_v25  ;;  %v801_v33 = vadd.f32 %v254_v26, %v238_v22  ;;  %vm297_vm1 = vcmp.gt.f32.partialorder %v534_v28, 0.0  ;;  %v228_v54 = vld [vmem:[%s760_s28 + $0x60] sm:$0xff]  ;;  %v245_v56 = vld [vmem:[%s766_s4 + $0x68] sm:$0xff]  ;;  %v246_v58 = vld [vmem:[%s766_s4 + $0x70] sm:$0xff] }
  0x1f   : > { %v549_v36 = vsel %vm296_vm0, 1.0, %v682_v35  ;;  %vm298_vm2 = vcmp.gt.f32.partialorder %v535_v29, 0.0  ;;  %v360_v39 = vsel %vm296_vm0, 0.0, %v264_v12  ;;  %v550_v40 = vsel %vm297_vm1, 1.0, %v682_v35  ;;  %v244_v55 = vld [vmem:[%s766_s4 + $0x60] sm:$0xff]  ;;  %v247_v59 = vld [vmem:[%s766_s4 + $0x78] sm:$0xff]  ;;  %p642_p3 = pnand %p641_p2, %p637_p13 }
  0x20   : > { %344 = vst [vmem:[%s807_s7] sm:$0xff] %v549_v36  ;;  %v551_v41 = vsel %vm298_vm2, 1.0, %v682_v35  ;;  %vm299_vm3 = vcmp.gt.f32.partialorder %v799_v32, 0.0  ;;  %v825_v44 = vadd.f32 -1.0, %v794_v30  ;;  %v828_v45 = vadd.f32 -1.0, %v796_v31  ;;  %v229_v62 = vld [vmem:[%s760_s28 + $0x68] sm:$0xff]  ;;  %v230_v3 = vld [vmem:[%s760_s28 + $0x70] sm:$0xff] }
  0x21   : > { %345 = vst [vmem:[%s807_s7 + $0x8] sm:$0xff] %v550_v40  ;;  %v831_v46 = vadd.f32 -1.0, %v801_v33  ;;  %v552_v51 = vsel %vm299_vm3, 1.0, %v682_v35  ;;  %v841_v52 = vadd.f32 %v255_v34, %v239_v27  ;;  %v256_v53 = vsub.f32 %v224_v37, %v240_v38 }
  0x22   : > { %346 = vst [vmem:[%s807_s7 + $0x10] sm:$0xff] %v551_v41  ;;  %vm300_vm4 = vcmp.gt.f32.partialorder %v825_v44, 0.0  ;;  %vm301_vm5 = vcmp.gt.f32.partialorder %v828_v45, 0.0  ;;  %v257_v57 = vsub.f32 %v225_v42, %v241_v43  ;;  %v361_v63 = vsel %vm297_vm1, 0.0, %v265_v17 }
  0x23   : > { %347 = vst [vmem:[%s807_s7 + $0x18] sm:$0xff] %v552_v51  ;;  %vm302_vm6 = vcmp.gt.f32.partialorder %v831_v46, 0.0  ;;  %v553_v60 = vsel %vm300_vm4, 1.0, %v682_v35  ;;  %v554_v61 = vsel %vm301_vm5, 1.0, %v682_v35  ;;  %v540_v1 = vadd.f32 -1.0, %v841_v52 }
  0x24   : > { %376 = vst [vmem:[%s820_s10] sm:$0xff] %v360_v39  ;;  %v555_v0 = vsel %vm302_vm6, 1.0, %v682_v35  ;;  %v866_v2 = vadd.f32 %v256_v53, %v240_v38  ;;  %v870_v4 = vadd.f32 %v257_v57, %v241_v43  ;;  %v258_v5 = vsub.f32 %v226_v47, %v242_v48 }
  0x25   : > { %348 = vst [vmem:[%s807_s7 + $0x20] sm:$0xff] %v553_v60  ;;  %v259_v6 = vsub.f32 %v227_v49, %v243_v50  ;;  %v260_v7 = vsub.f32 %v228_v54, %v244_v55  ;;  %v362_v8 = vsel %vm298_vm2, 0.0, %v785_v18  ;;  %vm303_vm7 = vcmp.gt.f32.partialorder %v540_v1, 0.0  ;;  %v231_v18 = vld [vmem:[%s760_s28 + $0x78] sm:$0xff] }
  0x26   : > { %349 = vst [vmem:[%s807_s7 + $0x28] sm:$0xff] %v554_v61  ;;  %v541_v9 = vadd.f32 -1.0, %v866_v2  ;;  %v261_v10 = vsub.f32 %v229_v62, %v245_v56  ;;  %v556_v11 = vsel %vm303_vm7, 1.0, %v682_v35  ;;  %v542_v12 = vadd.f32 -1.0, %v870_v4 }
  0x27   : > { %350 = vst [vmem:[%s807_s7 + $0x30] sm:$0xff] %v555_v0  ;;  %v274_v13 = vadd.f32 %v258_v5, %v242_v48  ;;  %v262_v14 = vsub.f32 %v230_v3, %v246_v58  ;;  %v275_v15 = vadd.f32 %v259_v6, %v243_v50  ;;  %v276_v16 = vadd.f32 %v260_v7, %v244_v55 }
  0x28   : > { %377 = vst [vmem:[%s820_s10 + $0x8] sm:$0xff] %v361_v63  ;;  %vm304_vm8 = vcmp.gt.f32.partialorder %v541_v9, 0.0  ;;  %v277_v17 = vadd.f32 %v261_v10, %v245_v56  ;;  %v363_v19 = vsel %vm299_vm3, 0.0, %v790_v25  ;;  %vm305_vm9 = vcmp.gt.f32.partialorder %v542_v12, 0.0 }
  0x29   : > { %351 = vst [vmem:[%s807_s7 + $0x38] sm:$0xff] %v556_v11  ;;  %v557_v20 = vsel %vm304_vm8, 1.0, %v682_v35  ;;  %v543_v21 = vadd.f32 -1.0, %v274_v13  ;;  %v558_v22 = vsel %vm305_vm9, 1.0, %v682_v35  ;;  %v544_v23 = vadd.f32 -1.0, %v275_v15 }
  0x2a   : > { %378 = vst [vmem:[%s820_s10 + $0x10] sm:$0xff] %v362_v8  ;;  %v545_v24 = vadd.f32 -1.0, %v276_v16  ;;  %v546_v26 = vadd.f32 -1.0, %v277_v17  ;;  %v278_v25 = vadd.f32 %v262_v14, %v246_v58  ;;  %v263_v27 = vsub.f32 %v231_v18, %v247_v59 }
  0x2b   : > { %352 = vst [vmem:[%s807_s7 + $0x40] sm:$0xff] %v557_v20  ;;  %vm306_vm10 = vcmp.gt.f32.partialorder %v543_v21, 0.0  ;;  %vm307_vm11 = vcmp.gt.f32.partialorder %v544_v23, 0.0  ;;  %v364_v34 = vsel %vm300_vm4, 0.0, %v794_v30  ;;  %v365_v39 = vsel %vm301_vm5, 0.0, %v796_v31 }
  0x2c   : > { %353 = vst [vmem:[%s807_s7 + $0x48] sm:$0xff] %v558_v22  ;;  %v559_v28 = vsel %vm306_vm10, 1.0, %v682_v35  ;;  %vm308_vm12 = vcmp.gt.f32.partialorder %v545_v24, 0.0  ;;  %v560_v29 = vsel %vm307_vm11, 1.0, %v682_v35  ;;  %vm309_vm13 = vcmp.gt.f32.partialorder %v546_v26, 0.0 }
  0x2d   : > { %379 = vst [vmem:[%s820_s10 + $0x18] sm:$0xff] %v363_v19  ;;  %v561_v32 = vsel %vm308_vm12, 1.0, %v682_v35  ;;  %v547_v36 = vadd.f32 -1.0, %v278_v25  ;;  %v279_v37 = vadd.f32 %v263_v27, %v247_v59  ;;  %v562_v38 = vsel %vm309_vm13, 1.0, %v682_v35 }
  0x2e   : > { %354 = vst [vmem:[%s807_s7 + $0x50] sm:$0xff] %v559_v28  ;;  %v366_v41 = vsel %vm302_vm6, 0.0, %v801_v33  ;;  %v367_v31 = vsel %vm303_vm7, 0.0, %v841_v52  ;;  %v368_v43 = vsel %vm304_vm8, 0.0, %v866_v2  ;;  %v369_v33 = vsel %vm305_vm9, 0.0, %v870_v4 }
  0x2f   : > { %355 = vst [vmem:[%s807_s7 + $0x58] sm:$0xff] %v560_v29  ;;  %vm310_vm14 = vcmp.gt.f32.partialorder %v547_v36, 0.0  ;;  %v548_v30 = vadd.f32 -1.0, %v279_v37  ;;  %v370_v44 = vsel %vm306_vm10, 0.0, %v274_v13  ;;  %v372_v45 = vsel %vm308_vm12, 0.0, %v276_v16 }
  0x30   : > { %356 = vst [vmem:[%s807_s7 + $0x60] sm:$0xff] %v561_v32  ;;  %v563_v40 = vsel %vm310_vm14, 1.0, %v682_v35  ;;  %v373_v46 = vsel %vm309_vm13, 0.0, %v277_v17  ;;  %v374_v47 = vsel %vm310_vm14, 0.0, %v278_v25 }
  0x31   : > { %357 = vst [vmem:[%s807_s7 + $0x68] sm:$0xff] %v562_v38  ;;  %vm311_vm15 = vcmp.gt.f32.partialorder %v548_v30, 0.0 }
  0x32   : > { %380 = vst [vmem:[%s820_s10 + $0x20] sm:$0xff] %v364_v34  ;;  %v564_v42 = vsel %vm311_vm15, 1.0, %v682_v35  ;;  %v371_v35 = vsel %vm307_vm11, 0.0, %v275_v15  ;;  %v375_v48 = vsel %vm311_vm15, 0.0, %v279_v37 }
  0x33   : > { %358 = vst [vmem:[%s807_s7 + $0x70] sm:$0xff] %v563_v40 }
  0x34   : > { %381 = vst [vmem:[%s820_s10 + $0x28] sm:$0xff] %v365_v39 }
  0x35   : > { %359 = vst [vmem:[%s807_s7 + $0x78] sm:$0xff] %v564_v42 }
  0x36   : > { %382 = vst [vmem:[%s820_s10 + $0x30] sm:$0xff] %v366_v41 }
  0x37   : > { %383 = vst [vmem:[%s820_s10 + $0x38] sm:$0xff] %v367_v31 }
  0x38   : > { %384 = vst [vmem:[%s820_s10 + $0x40] sm:$0xff] %v368_v43 }
  0x39   : > { %385 = vst [vmem:[%s820_s10 + $0x48] sm:$0xff] %v369_v33 }
  0x3a   : > { %386 = vst [vmem:[%s820_s10 + $0x50] sm:$0xff] %v370_v44 }
  0x3b   : > { %387 = vst [vmem:[%s820_s10 + $0x58] sm:$0xff] %v371_v35 }
  0x3c   : > { %388 = vst [vmem:[%s820_s10 + $0x60] sm:$0xff] %v372_v45 }
  0x3d   : > { %389 = vst [vmem:[%s820_s10 + $0x68] sm:$0xff] %v373_v46 }
  0x3e   : > { %390 = vst [vmem:[%s820_s10 + $0x70] sm:$0xff] %v374_v47 }
  0x3f   : > { %391 = vst [vmem:[%s820_s10 + $0x78] sm:$0xff] %v375_v48 }
  0x40   : > { %645 = shalt.err (!%p642_p3)
}
  0x41   : > { %s683_s5 = smov 256   ;;  %s684_s7 = smov 16  }
  0x42   : > { %576 = dma.vmem_to_hbm [thread:$0]  (%p743_p5), %s413_s16, 2048, %s415_s24, %s393_s25, %s683_s5, %s683_s5, %s684_s7  }
  0x43 PF: > { %p582_p4 = scmp.ge.s32.totalorder %s680_s15, 2  ;;  %s433_s8 = sand.u32 1, %s668_s12  }
  0x44   : > { %s434_s9 = scalar_lea.sflag [#allocation3], %s433_s8 }
  0x45   : > { %p579_p7 = pnand %p582_p4, %p747_p6 }
  0x47   : > { %p580_p8 = pneg %p579_p7 }
  0x49   : > { %663 = dma.done.wait (%p580_p8), %s434_s9, 2048  }
  0x4a   : > { %665 = vsyncadd (%p580_p8), %s434_s9, 4294965248  ;;  %p14_p9 = scmp.ge.s32.totalorder %s730_s18, 4   ;;  %s984_s12 = smov %s672_s13 }
  0x4b   : > { %s985_s13 = smov %s676_s14  ;;  %s986_s14 = smov %s741_s21 }
  0x4c   : > { %s987_s15 = smov %s730_s18  ;;  %16 = sbr.rel (!%p14_p9) target bundleno = 3 (0x3), region = 78 }
  0x51   :  { %449 = vsyncpa [#allocation3], 1 }
  0x52   :  { %451 = vsyncpa [#allocation3 + $0x1], 1 }

</bundles_post_ra>
